<compile_context>
chip_gen: v5e
topology: v5e:2x2
jax: 0.10.0
libtpu: 0.0.40
codegen_flags: <defaults>
</compile_context>

<pallas_src>
from functools import partial

import jax
import jax.numpy as jnp
from jax.experimental import pallas as pl
from jax.experimental.pallas import tpu as pltpu

_LANES = 128
_MAX_BLOCK_ROWS = 1024  # 1024*128*4B = 512 KiB per f32 buffer; fits all gens.


def _copy_kernel(x_ref, o_ref):
    # Forward pass is `return x` -> straight tile copy.
    o_ref[...] = x_ref[...]


def _lane_dense_copy(x2d: jax.Array) -> jax.Array:
    """Pipelined identity copy of a (rows, 128) lane-dense array."""
    rows, lanes = x2d.shape
    block_rows = min(rows, _MAX_BLOCK_ROWS)
    grid = (pl.cdiv(rows, block_rows),)
    nbytes = x2d.size * x2d.dtype.itemsize

    return pl.pallas_call(
        _copy_kernel,
        out_shape=jax.ShapeDtypeStruct(x2d.shape, x2d.dtype),
        grid_spec=pltpu.PrefetchScalarGridSpec(
            num_scalar_prefetch=0,
            grid=grid,
            in_specs=[pl.BlockSpec((block_rows, lanes), lambda i: (i, 0))],
            out_specs=pl.BlockSpec((block_rows, lanes), lambda i: (i, 0)),
        ),
        input_output_aliases={0: 0},
        cost_estimate=pl.CostEstimate(
            flops=0, transcendentals=0, bytes_accessed=2 * nbytes
        ),
        compiler_params=pltpu.CompilerParams(
            dimension_semantics=("parallel",)
        ),
    )(x2d)


def _full_block_copy(x: jax.Array) -> jax.Array:
    """Fallback for sizes not divisible by 128: single full-array block."""
    return pl.pallas_call(
        _copy_kernel,
        out_shape=jax.ShapeDtypeStruct(x.shape, x.dtype),
        in_specs=[pl.BlockSpec(x.shape, lambda: (0,) * x.ndim)],
        out_specs=pl.BlockSpec(x.shape, lambda: (0,) * x.ndim),
        input_output_aliases={0: 0},
        cost_estimate=pl.CostEstimate(
            flops=0,
            transcendentals=0,
            bytes_accessed=2 * x.size * x.dtype.itemsize,
        ),
    )(x)


@partial(jax.jit, static_argnames=("input_shape",))
def test_model_forward(x: jax.Array, *, input_shape) -> jax.Array:
    # Mirror the PyTorch `assert x.shape == self._input_shape` (trace-time).
    assert x.shape == tuple(input_shape), (x.shape, input_shape)

    if x.size % _LANES == 0 and x.size > 0:
        # Lane-dense path: collapse all dims into (rows, 128), copy, restore.
        x2d = x.reshape(-1, _LANES)
        y2d = _lane_dense_copy(x2d)
        return y2d.reshape(x.shape)
    # TODO(synk): sizes not divisible by 128 fall back to a single
    # (possibly lane-masked) full-array block copy.
    return _full_block_copy(x)


if __name__ == "__main__":
    input_shape = (2, 4, 16, 16)  # N, C, H, W
    key = jax.random.PRNGKey(0)
    x = jax.random.normal(key, input_shape, dtype=jnp.float32)

    y = test_model_forward(x, input_shape=input_shape)
    jax.block_until_ready(y)

    assert y.shape == x.shape
    assert y.dtype == x.dtype
    assert bool(jnp.all(y == x))

    print("KERNEL_OK")
</pallas_src>

<mosaic_0001>
module attributes {stable_mosaic.version = 11 : i64} {
  func.func @_copy_kernel(%arg0: i32, %arg1: memref<16x128xf32, #tpu.memory_space<vmem>>, %arg2: memref<16x128xf32, #tpu.memory_space<vmem>>) attributes {dimension_semantics = [#tpu.dimension_semantics<parallel>], iteration_bounds = array<i64: 1>, scalar_prefetch = 0 : i64, scratch_operands = 0 : i64, tpu.core_type = #tpu.core_type<tc>, window_params = [{transform_indices = @transform_0, window_bounds = array<i64: 16, 128>}, {transform_indices = @transform_1, window_bounds = array<i64: 16, 128>}]} {
    %c0 = arith.constant 0 : index
    %c0_0 = arith.constant 0 : index
    %0 = vector.load %arg1[%c0, %c0_0] : memref<16x128xf32, #tpu.memory_space<vmem>>, vector<16x128xf32>
    %c0_1 = arith.constant 0 : index
    %c0_2 = arith.constant 0 : index
    %1 = vector.load %arg2[%c0_1, %c0_2] : memref<16x128xf32, #tpu.memory_space<vmem>>, vector<16x128xf32>
    tpu.vector_store %arg2[%c0_1, %c0_2], %0 {strides = array<i32>} : memref<16x128xf32, #tpu.memory_space<vmem>>, vector<16x128xf32>,
    return
  }
  func.func @transform_0(%arg0: i32) -> (i32, i32) {
    %c0_i32 = arith.constant 0 : i32
    %c0_i32_0 = arith.constant 0 : i32
    return %arg0, %c0_i32 : i32, i32
  }
  func.func @transform_1(%arg0: i32) -> (i32, i32) {
    %c0_i32 = arith.constant 0 : i32
    %c0_i32_0 = arith.constant 0 : i32
    return %arg0, %c0_i32 : i32, i32
  }
}

</mosaic_0001>

<bundles_post_ra>
// kernel: test_model_forward.1
= control target key start
LH: loop header
LB: loop body
LE: loop exit
PB: predicated region body
PF: predicated region fallthrough
CT: control target
= control target key end

     0   :  { %s38_s0 = inlined_call_operand.vmem [shape: f32[16,128], index: 0, kind: input, shape index: {}, may-alias: {0,1}]   ;;  %s39_s1 = inlined_call_operand.vmem [shape: f32[16,128], index: 1, kind: output, shape index: {}, may-alias: {0,1}]  }
   0x1   :  { %v8_v0 = vld [vmem:[%s38_s0] sm:$0xff]  ;;  %v9_v1 = vld [vmem:[%s38_s0 + $0x8] sm:$0xff] }
   0x2   :  { %10 = vst [vmem:[%s39_s1] sm:$0xff] %v8_v0 }
   0x3   :  { %11 = vst [vmem:[%s39_s1 + $0x8] sm:$0xff] %v9_v1 }

</bundles_post_ra>
